<compile_context>
chip_gen: v6e
topology: v6e:2x2x1
jax: 0.10.0
libtpu: 0.0.40
codegen_flags: <defaults>
</compile_context>

<pallas_src>
import math

import jax
import jax.numpy as jnp
from jax.experimental import pallas as pl
from jax.experimental.pallas import tpu as pltpu


def _round_up(x: int, m: int) -> int:
    return ((x + m - 1) // m) * m


def gcn_kernel(text_ref, adj_ref, w_ref, b_ref, out_ref):
    bt, n, f_in = text_ref.shape
    f_out = w_ref.shape[1]

    # Shared projection: one MXU matmul over all Bt*N packed rows.  Operands
    # stay in their storage dtype (bf16 fast path) with f32 accumulation.
    text2d = text_ref[...].reshape(bt * n, f_in)
    hidden = jnp.dot(text2d, w_ref[...], preferred_element_type=jnp.float32)
    hidden = hidden.reshape(bt, n, f_out)

    adj = adj_ref[...]

    # denom = row-sum of adj + 1, accumulated in f32 WITHOUT materializing a
    # full f32 copy of the (largest) adjacency block.
    denom = jnp.sum(adj, axis=-1, keepdims=True, dtype=jnp.float32) + 1.0

    # Per-batch aggregation over the packed slice (batched MXU matmul, f32 acc).
    agg = jnp.einsum(
        "bij,bjd->bid",
        adj,
        hidden.astype(adj.dtype),
        preferred_element_type=jnp.float32,
    )

    # Approx reciprocal (EUP, effectively free) on the reduced-precision path;
    # exact divide when the caller asked for the bit-faithful f32 path.
    approx = adj.dtype != jnp.float32
    out = agg * pl.reciprocal(denom, approx=approx) + b_ref[...].astype(jnp.float32)
    out_ref[...] = out.astype(out_ref.dtype)


def _vmem_caps():
    """(vmem_limit_bytes, block budget bytes) derived from physical VMEM."""
    phys = 64 * 1024 * 1024           # conservative fallback == v7x (64 MiB/TC)
    try:
        phys = int(pltpu.get_tpu_info().vmem_capacity_bytes)
    except Exception:
        pass
    # Leave headroom for compiler-internal scratch; cap at 96 MiB on 128 MiB parts.
    limit = min(max(phys - 16 * 1024 * 1024, 32 * 1024 * 1024), 96 * 1024 * 1024)
    budget = (limit * 3) // 5
    return limit, budget


def _pick_block_batch(B, N_p, F_in, F_out_p, *, text_bytes, adj_bytes, w_bytes,
                      out_bytes, vmem_budget_bytes):
    """Largest batch-group Bt (a divisor of B, kept <= B//2 so the grid has at
    least two steps for v7x's two TensorCores) whose TOTAL live VMEM fits the
    budget.  Bt grows by bytes (per-step overhead is amortized once the adj tile
    reaches a few MiB), not just by an MXU row-fill target."""

    def live_bytes(bt):
        blocks = (bt * N_p * F_in * text_bytes         # text tile
                  + bt * N_p * N_p * adj_bytes         # adj tile
                  + bt * N_p * F_out_p * out_bytes)    # output tile
        fixed = F_in * F_out_p * w_bytes + F_out_p * 4  # weight + bias buffers
        interm = 2 * bt * N_p * F_out_p * 4              # hidden + agg (f32)
        return 2 * blocks + 2 * fixed + interm            # x2 = double-buffering

    max_bt = max(1, B // 2)   # >= 2 grid steps when B >= 2 (v7x dual TensorCore)
    divisors = [d for d in range(1, B + 1) if B % d == 0 and d <= max_bt] or [1]
    # TODO(synk): support non-divisor Bt (cdiv grid + batch padding) so a prime
    # batch size does not collapse to Bt=1.

    target_adj_bytes = 8 * 1024 * 1024
    best = 1
    for d in divisors:
        if live_bytes(d) > vmem_budget_bytes:
            break
        best = d
        if d * N_p * N_p * adj_bytes >= target_adj_bytes and d * N_p >= 256:
            break
    return best


def graph_convolution(text, adj, weight, bias=None, *, block_batch=None,
                      compute_dtype=jnp.bfloat16, out_dtype=jnp.float32):
    """text: (B, N, F_in), adj: (B, N, N), weight: (F_in, F_out), bias: (F_out,).

    compute_dtype is the MXU operand dtype (bf16 by default; accumulation and
    the elementwise epilogue are always f32).  compute_dtype=jnp.float32
    reproduces the PyTorch module's f32 math exactly (slow multi-pass MXU path).
    """
    B, N, F_in = text.shape
    F_out = weight.shape[1]

    compute_dtype = jnp.dtype(compute_dtype)
    out_dtype = jnp.dtype(out_dtype)

    text = text.astype(compute_dtype)
    weight = weight.astype(compute_dtype)
    adj = adj.astype(compute_dtype)
    if bias is None:
        bias = jnp.zeros((F_out,), jnp.float32)
    bias = bias.astype(jnp.float32)

    # Lane-dense output: pad F_out (weight columns / bias) to a multiple of 128.
    # TODO(synk): for wide F_out (many hundreds), benchmark masked stores (no
    # pad, no slice pass) against pad+slice; padding clearly wins only for
    # narrow F_out.
    F_out_p = _round_up(F_out, 128)
    if F_out_p != F_out:
        weight = jnp.pad(weight, ((0, 0), (0, F_out_p - F_out)))
        bias = jnp.pad(bias, (0, F_out_p - F_out))
    bias2d = bias.reshape(1, F_out_p)

    # Pad N to the sublane-packing multiple of the compute dtype (16 for bf16,
    # 8 for f32) so the in-kernel (Bt,N,F_in)->(Bt*N,F_in) merge is copy-free.
    # Padded adj rows/cols are zero: real row-sums are unchanged, pad rows give
    # denom=1 / out=bias and are sliced off below.
    sub = 8 * 4 // compute_dtype.itemsize
    N_p = _round_up(N, sub)
    if N_p != N:
        text = jnp.pad(text, ((0, 0), (0, N_p - N), (0, 0)))
        adj = jnp.pad(adj, ((0, 0), (0, N_p - N), (0, N_p - N)))

    vmem_limit, vmem_budget = _vmem_caps()
    if block_batch is not None:
        Bt = block_batch
    else:
        Bt = _pick_block_batch(
            B, N_p, F_in, F_out_p,
            text_bytes=compute_dtype.itemsize,
            adj_bytes=compute_dtype.itemsize,
            w_bytes=compute_dtype.itemsize,
            out_bytes=out_dtype.itemsize,
            vmem_budget_bytes=vmem_budget,
        )
    assert B % Bt == 0, (B, Bt)
    grid = (B // Bt,)

    out_padded = pl.pallas_call(
        gcn_kernel,
        out_shape=jax.ShapeDtypeStruct((B, N_p, F_out_p), out_dtype),
        grid_spec=pltpu.PrefetchScalarGridSpec(
            num_scalar_prefetch=0,
            grid=grid,
            in_specs=[
                pl.BlockSpec((Bt, N_p, F_in), lambda g: (g, 0, 0)),   # text (packed batch)
                pl.BlockSpec((Bt, N_p, N_p), lambda g: (g, 0, 0)),    # adj  (packed batch)
                # TODO(synk): pipeline_mode=pl.Buffered(1) would drop the second
                # (unused) buffer for these constant-index operands; kept at the
                # default for compile robustness and accounted for in the
                # _pick_block_batch VMEM estimate instead.
                pl.BlockSpec((F_in, F_out_p), lambda g: (0, 0)),      # weight, shared
                pl.BlockSpec((1, F_out_p), lambda g: (0, 0)),         # bias,   shared
            ],
            out_specs=pl.BlockSpec((Bt, N_p, F_out_p), lambda g: (g, 0, 0)),
        ),
        compiler_params=pltpu.CompilerParams(
            dimension_semantics=("parallel",),
            vmem_limit_bytes=vmem_limit,
        ),
    )(text, adj, weight, bias2d)

    # Strip lane / sublane padding only when there actually is any (avoid an
    # extra HBM pass for already-aligned shapes).
    if N_p != N or F_out_p != F_out:
        return out_padded[:, :N, :F_out]
    return out_padded


if __name__ == "__main__":
    # Small shapes consistent with the module's forward semantics.
    B, N, F_in, F_out = 2, 8, 32, 32

    key = jax.random.PRNGKey(0)
    k_text, k_adj, k_w, k_b = jax.random.split(key, 4)

    # Deterministic parameter init mimicking reset_parameters():
    # uniform(-stdv, stdv) with stdv = 1/sqrt(out_features)
    stdv = 1.0 / math.sqrt(F_out)
    weight = jax.random.uniform(k_w, (F_in, F_out), jnp.float32, -stdv, stdv)
    bias = jax.random.uniform(k_b, (F_out,), jnp.float32, -stdv, stdv)

    # Inputs: 0/1 adjacency like a (dense) graph.
    text = jax.random.normal(k_text, (B, N, F_in), jnp.float32)
    adj = (jax.random.uniform(k_adj, (B, N, N), jnp.float32) > 0.4).astype(jnp.float32)

    # Pure-JAX reference (matches the PyTorch module).
    hidden = jnp.matmul(text, weight)
    denom = jnp.sum(adj, axis=2, keepdims=True) + 1.0
    ref = jnp.matmul(adj, hidden) / denom + bias

    # Bit-faithful path (f32 MXU operands, exact divide).
    out_f32 = jax.block_until_ready(
        graph_convolution(text, adj, weight, bias, compute_dtype=jnp.float32))
    assert out_f32.shape == ref.shape
    assert jnp.allclose(out_f32, ref, atol=1e-5, rtol=1e-5), "f32 path mismatch"

    # Default fast path (bf16 MXU operands, f32 accumulation, f32 epilogue).
    out_fast = jax.block_until_ready(graph_convolution(text, adj, weight, bias))
    assert out_fast.shape == ref.shape
    assert jnp.allclose(out_fast, ref, atol=5e-2, rtol=5e-2), "bf16 path mismatch"

    print("KERNEL_OK")
</pallas_src>

<mosaic_0001>
module attributes {stable_mosaic.version = 11 : i64} {
  func.func @gcn_kernel(%arg0: i32, %arg1: memref<1x8x32xf32, #tpu.memory_space<vmem>>, %arg2: memref<1x8x8xf32, #tpu.memory_space<vmem>>, %arg3: memref<32x128xf32, #tpu.memory_space<vmem>>, %arg4: memref<1x128xf32, #tpu.memory_space<vmem>>, %arg5: memref<1x8x128xf32, #tpu.memory_space<vmem>>) attributes {dimension_semantics = [#tpu.dimension_semantics<parallel>], iteration_bounds = array<i64: 2>, scalar_prefetch = 0 : i64, scratch_operands = 0 : i64, tpu.core_type = #tpu.core_type<tc>, window_params = [{transform_indices = @transform_0, window_bounds = array<i64: 1, 8, 32>}, {transform_indices = @transform_1, window_bounds = array<i64: 1, 8, 8>}, {pipeline_mode = #tpu.pipeline_mode<synchronous>, transform_indices = @transform_2, window_bounds = array<i64: 32, 128>}, {pipeline_mode = #tpu.pipeline_mode<synchronous>, transform_indices = @transform_3, window_bounds = array<i64: 1, 128>}, {transform_indices = @transform_4, window_bounds = array<i64: 1, 8, 128>}]} {
    %c0 = arith.constant 0 : index
    %c0_0 = arith.constant 0 : index
    %c0_1 = arith.constant 0 : index
    %0 = vector.load %arg1[%c0, %c0_0, %c0_1] : memref<1x8x32xf32, #tpu.memory_space<vmem>>, vector<1x8x32xf32>
    %1 = vector.shape_cast %0 : vector<1x8x32xf32> to vector<8x32xf32>
    %c0_2 = arith.constant 0 : index
    %c0_3 = arith.constant 0 : index
    %2 = vector.load %arg3[%c0_2, %c0_3] : memref<32x128xf32, #tpu.memory_space<vmem>>, vector<32x128xf32>
    %cst = arith.constant dense<0.000000e+00> : vector<8x128xf32>
    %3 = tpu.matmul %1, %2, %cst {dimension_numbers = #tpu.dot_dimension_numbers<[1], [0], [0], [1], [0, 0, 1, 1], [], []>} : vector<8x32xf32>, vector<32x128xf32>, vector<8x128xf32> -> vector<8x128xf32>
    %4 = vector.shape_cast %3 : vector<8x128xf32> to vector<1x8x128xf32>
    %c0_4 = arith.constant 0 : index
    %c0_5 = arith.constant 0 : index
    %c0_6 = arith.constant 0 : index
    %5 = vector.load %arg2[%c0_4, %c0_5, %c0_6] : memref<1x8x8xf32, #tpu.memory_space<vmem>>, vector<1x8x8xf32>
    %cst_7 = arith.constant dense<0.000000e+00> : vector<1x8xf32>
    %6 = vector.multi_reduction <add>, %5, %cst_7 [2] : vector<1x8x8xf32> to vector<1x8xf32>
    %7 = vector.shape_cast %6 : vector<1x8xf32> to vector<1x8x1xf32>
    %cst_8 = arith.constant 1.000000e+00 : f32
    %8 = vector.broadcast %cst_8 : f32 to vector<1x8x1xf32>
    %9 = arith.addf %7, %8 : vector<1x8x1xf32>
    "tpu.trace_start"() <{level = 10 : i32, message = "bij,bjd->bid"}> : () -> ()
    %cst_9 = arith.constant dense<0.000000e+00> : vector<1x8x128xf32>
    %10 = tpu.matmul %5, %4, %cst_9 {dimension_numbers = #tpu.dot_dimension_numbers<[2], [1], [1], [2], [0, 0, 0, 1, 1, 2], [0], [0]>} : vector<1x8x8xf32>, vector<1x8x128xf32>, vector<1x8x128xf32> -> vector<1x8x128xf32>
    "tpu.trace_stop"() : () -> ()
    %11 = tpu.reciprocal %9 : vector<1x8x1xf32> -> vector<1x8x1xf32>
    %12 = vector.broadcast %11 : vector<1x8x1xf32> to vector<1x8x128xf32>
    %13 = arith.mulf %10, %12 : vector<1x8x128xf32>
    %c0_10 = arith.constant 0 : index
    %c0_11 = arith.constant 0 : index
    %14 = vector.load %arg4[%c0_10, %c0_11] : memref<1x128xf32, #tpu.memory_space<vmem>>, vector<1x128xf32>
    %15 = vector.shape_cast %14 : vector<1x128xf32> to vector<1x1x128xf32>
    %16 = vector.broadcast %15 : vector<1x1x128xf32> to vector<1x8x128xf32>
    %17 = arith.addf %13, %16 : vector<1x8x128xf32>
    %c0_12 = arith.constant 0 : index
    %c0_13 = arith.constant 0 : index
    %c0_14 = arith.constant 0 : index
    %18 = vector.load %arg5[%c0_12, %c0_13, %c0_14] : memref<1x8x128xf32, #tpu.memory_space<vmem>>, vector<1x8x128xf32>
    tpu.vector_store %arg5[%c0_12, %c0_13, %c0_14], %17 {strides = array<i32>} : memref<1x8x128xf32, #tpu.memory_space<vmem>>, vector<1x8x128xf32>,
    return
  }
  func.func @transform_0(%arg0: i32) -> (i32, i32, i32) {
    %c0_i32 = arith.constant 0 : i32
    %c0_i32_0 = arith.constant 0 : i32
    %c0_i32_1 = arith.constant 0 : i32
    return %arg0, %c0_i32, %c0_i32_0 : i32, i32, i32
  }
  func.func @transform_1(%arg0: i32) -> (i32, i32, i32) {
    %c0_i32 = arith.constant 0 : i32
    %c0_i32_0 = arith.constant 0 : i32
    %c0_i32_1 = arith.constant 0 : i32
    return %arg0, %c0_i32, %c0_i32_0 : i32, i32, i32
  }
  func.func @transform_2(%arg0: i32) -> (i32, i32) {
    %c0_i32 = arith.constant 0 : i32
    %c0_i32_0 = arith.constant 0 : i32
    %c0_i32_1 = arith.constant 0 : i32
    return %c0_i32, %c0_i32_0 : i32, i32
  }
  func.func @transform_3(%arg0: i32) -> (i32, i32) {
    %c0_i32 = arith.constant 0 : i32
    %c0_i32_0 = arith.constant 0 : i32
    %c0_i32_1 = arith.constant 0 : i32
    return %c0_i32, %c0_i32_0 : i32, i32
  }
  func.func @transform_4(%arg0: i32) -> (i32, i32, i32) {
    %c0_i32 = arith.constant 0 : i32
    %c0_i32_0 = arith.constant 0 : i32
    %c0_i32_1 = arith.constant 0 : i32
    return %arg0, %c0_i32, %c0_i32_0 : i32, i32, i32
  }
}

</mosaic_0001>

<bundles_post_ra>
// kernel: tpu_custom_call.1
= control target key start
LH: loop header
LB: loop body
LE: loop exit
PB: predicated region body
PF: predicated region fallthrough
CT: control target
= control target key end

     0   :  { %s1050_s0 = inlined_call_operand.hbm [shape: f32[2,8,32], index: 0, kind: input, shape index: {}]   ;;  %s1051_s1 = inlined_call_operand.hbm [shape: f32[2,8,8], index: 1, kind: input, shape index: {}]   ;;  %s1052_s2 = inlined_call_operand.hbm [shape: f32[32,128], index: 2, kind: input, shape index: {}]   ;;  %s1053_s3 = inlined_call_operand.vmem [shape: f32[1,128], index: 3, kind: input, shape index: {}]   ;;  %s1054_s4 = inlined_call_operand.hbm [shape: f32[2,8,128], index: 4, kind: output, shape index: {}]  }
   0x1   :  { %1059 = sst [smem:[#allocation13_spill]] %s1052_s2 }
   0x2   :  { %9 = vsyncpa [#allocation3], 0 }
   0x3   :  { %11 = vsyncpa [#allocation3 + $0x1], 0 }
   0x4   :  { %12 = vsyncpa [#allocation6], 0 }
   0x5   :  { %14 = vsyncpa [#allocation6 + $0x1], 0 }
   0x6   :  { %15 = vsyncpa [#allocation4], 0 }
   0x7   :  { %17 = vsyncpa [#allocation4 + $0x1], 0  ;;  %s849_s15 = smov 0   ;;  %s851_s16 = smov 0  }
   0x8   :  { %s853_s17 = smov 0   ;;  %s855_s18 = smov 0  }
   0x9 LB: > { %s870_s19 = sadd.s32 4294967295, %s814_s18   ;;  %s549_s20 = sadd.s32 4294967294, %s814_s18   ;;  %s814_s18 = sphi %s855_s18, %s1078_s18   ;;  %s810_s17 = sphi %s853_s17, %s1077_s17   ;;  %s806_s16 = sphi %s851_s16, %s1076_s16   ;;  %s802_s15 = sphi %s849_s15, %s1075_s15  }
   0xa   : > { %p43_p0 = scmp.ne.s32.totalorder %s806_s16, %s802_s15  ;;  %p1055_p1 = scmp.eq.s32.totalorder %s870_s19, 0 }
   0xb   : > { %p141_p3 = scmp.eq.s32.totalorder %s549_s20, 1  ;;  %p550_p5 = scmp.ge.s32.totalorder %s814_s18, 1 }
   0xc   : > { %p879_p4 = por %p1055_p1, %p43_p0  ;;  %p148_p7 = scmp.lt.s32.totalorder %s814_s18, 3 }
   0xd   : > { %p884_p6 = por %p141_p3, %p43_p0  ;;  %s816_s24 = smov [#allocation7]  }
   0xe   : > { %s1060_s21 = scalar_select %p879_p4, 1, 0 }
   0xf   : > { %s1061_s22 = scalar_select %p884_p6, 1, 0 }
  0x10   : > { %p889_p8 = pnand %p550_p5, %p148_p7  ;;  %s160_s25 = sshll.u32 %s816_s24, 4  ;;  %s161_s25 = int_to_ptr.vmem [resolvable:$true] %s160_s25 }
  0x11   : > { %s903_s27 = sadd.s32 1, %s814_s18   ;;  %s30_s28 = sadd.s32 1, %s810_s17 }
  0x12   : > { %s1062_s23 = scalar_select %p889_p8, 1, 0 }
  0x13   : > { %p602_p9 = pneg %p889_p8  ;;  %s27_s29 = ssub.s32 %s814_s18, %s903_s27 }
  0x14   : > { %s671_s30 = scalar_lea.vmem %s161_s25, 512  ;;  %p679_p5 = scmp.lt.s32.totalorder %s161_s25, %s161_s25 }
  0x15   : > { %p898_p11 = pnand %p602_p9, %p1055_p1  ;;  %p672_p13 = scmp.ne.s32.totalorder %s161_s25, %s671_s30 }
  0x16   : > { %p680_p7 = scmp.lt.s32.totalorder %s671_s30, %s671_s30 }
  0x17   : > { %p662_p12 = pneg %p898_p11 }
  0x18   : > { %p681_p10 = por %p680_p7, %p679_p5 }
  0x19   : > { %p674_p0 = pnand %p672_p13, %p662_p12 }
  0x1b   : > { %p675_p3 = pneg %p674_p0 }
  0x1d   : > { %p682_p2 = pnand %p681_p10, %p675_p3 }
  0x1f   : > { %685 = shalt.err (!%p682_p2)
}
  0x20   : > { %s817_s5 = smov 128   ;;  %s818_s6 = smov 8  }
  0x21   : > { %s1064_s2 = sld [smem:[#allocation13_spill]]  ;;  %p28_p9 = scmp.eq.s32.totalorder %s27_s29, 0 }
  0x22   : > { %p37_p12 = scmp.ne.s32.totalorder %s810_s17, %s806_s16  ;;  %p38_p10 = scmp.eq.s32.totalorder %s814_s18, 0 }
  0x23   : > { %p618_p2 = scmp.lt.s32.totalorder %s814_s18, 2  ;;  %p1065_p0 = scmp.eq.s32.totalorder %s870_s19, 1 }
  0x24   : > { %s920_s9 = scalar_select %p28_p9, %s810_s17, %s30_s28  }
  0x25   : > { %p39_p13 = por %p38_p10, %p37_p12  ;;  %p924_p3 = por %p1065_p0, %p37_p12 }
  0x26   : > { %s177_s11 = sand.u32 1, %s810_s17   ;;  %s554_s12 = sshll.u32 %s814_s18, 7 }
  0x27   : > { %605 = dma.hbm_to_vmem [thread:$0]  (!%p898_p11), %s1064_s2, 512, %s161_s25, [#allocation6], %s817_s5, %s817_s5, %s818_s6  }
  0x28   : > { %s1066_s10 = scalar_select %p924_p3, 1, 0 }
  0x29   : > { %s930_s13 = sshll.u32 %s177_s11, 3  ;;  %s935_s24 = scalar_lea.hbm %s1050_s0, %s554_s12 }
  0x2a   : > { %s181_s25 = scalar_lea.vmem [#allocation2], %s930_s13  ;;  %p938_p11 = pnand %p618_p2, %p39_p13 }
  0x2b   : > { %s188_s26 = sshll.u32 %s181_s25, 4  ;;  %s945_s5 = scalar_lea.hbm %s1051_s1, %s554_s12  ;;  %s189_s26 = int_to_ptr.vmem [resolvable:$true] %s188_s26 }
  0x2c   : > { %s178_s6 = scalar_lea.sflag [#allocation3], %s177_s11  ;;  %s686_s7 = scalar_lea.hbm %s935_s24, 128 }
  0x2d   : > { %p687_p5 = scmp.ne.s32.totalorder %s935_s24, %s686_s7  ;;  %p688_p7 = pneg %p938_p11 }
  0x2e   : > { %s691_s20 = scalar_lea.hbm %s1050_s0, 256  ;;  %p692_p10 = scmp.lt.s32.totalorder %s935_s24, %s1050_s0 }
  0x2f   : > { %p689_p9 = pnand %p688_p7, %p687_p5  ;;  %p693_p2 = scmp.lt.s32.totalorder %s691_s20, %s686_s7 }
  0x31   : > { %p690_p12 = pneg %p689_p9  ;;  %p694_p13 = por %p693_p2, %p692_p10 }
  0x33   : > { %p695_p0 = pnand %p694_p13, %p690_p12 }
  0x35   : > { %698 = shalt.err (!%p695_p0)
}
  0x36   : > { %s699_s11 = scalar_lea.vmem %s189_s26, 128  ;;  %s819_s12 = smov [#allocation2]  }
  0x37   : > { %p700_p1 = scmp.ne.s32.totalorder %s189_s26, %s699_s11  ;;  %s704_s29 = sshll.u32 %s819_s12, 4  ;;  %s705_s29 = int_to_ptr.vmem [resolvable:$false] %s704_s29 }
  0x38   : > { %s706_s30 = scalar_lea.vmem %s705_s29, 256  ;;  %p707_p9 = scmp.lt.s32.totalorder %s189_s26, %s705_s29 }
  0x39   : > { %p702_p6 = pnand %p700_p1, %p688_p7  ;;  %p708_p3 = scmp.lt.s32.totalorder %s706_s30, %s699_s11 }
  0x3b   : > { %p703_p5 = pneg %p702_p6  ;;  %p709_p4 = por %p708_p3, %p707_p9 }
  0x3d   : > { %p710_p8 = pnand %p709_p4, %p703_p5 }
  0x3f   : > { %713 = shalt.err (!%p710_p8)
}
  0x40   : > { %609 = dma.hbm_to_vmem [thread:$0]  (!%p938_p11), %s935_s24, 128, %s189_s26, %s178_s6  }
  0x41   : > { %s195_s2 = sand.u32 1, %s814_s18   ;;  %s199_s7 = scalar_lea.vmem [#allocation5], %s930_s13 }
  0x42   : > { %s206_s8 = sshll.u32 %s199_s7, 4  ;;  %s196_s14 = scalar_lea.sflag [#allocation6], %s195_s2  ;;  %s207_s8 = int_to_ptr.vmem [resolvable:$true] %s206_s8 }
  0x43   : > { %s714_s20 = scalar_lea.hbm %s945_s5, 128  ;;  %s719_s12 = scalar_lea.hbm %s1051_s1, 256 }
  0x44   : > { %p715_p1 = scmp.ne.s32.totalorder %s945_s5, %s714_s20  ;;  %p720_p8 = scmp.lt.s32.totalorder %s945_s5, %s1051_s1 }
  0x45   : > { %p721_p3 = scmp.lt.s32.totalorder %s719_s12, %s714_s20 }
  0x46   : > { %p717_p4 = pnand %p715_p1, %p688_p7 }
  0x47   : > { %p722_p12 = por %p721_p3, %p720_p8 }
  0x48   : > { %p718_p6 = pneg %p717_p4 }
  0x4a   : > { %p723_p10 = pnand %p722_p12, %p718_p6 }
  0x4c   : > { %726 = shalt.err (!%p723_p10)
}
  0x4d   : > { %s727_s13 = scalar_lea.vmem %s207_s8, 128  ;;  %s820_s24 = smov [#allocation5]  }
  0x4e   : > { %p728_p2 = scmp.ne.s32.totalorder %s207_s8, %s727_s13  ;;  %s732_s26 = sshll.u32 %s820_s24, 4  ;;  %s733_s26 = int_to_ptr.vmem [resolvable:$false] %s732_s26 }
  0x4f   : > { %s734_s6 = scalar_lea.vmem %s733_s26, 256  ;;  %p735_p5 = scmp.lt.s32.totalorder %s207_s8, %s733_s26 }
  0x50   : > { %p730_p13 = pnand %p728_p2, %p688_p7  ;;  %p736_p9 = scmp.lt.s32.totalorder %s734_s6, %s727_s13 }
  0x52   : > { %p731_p0 = pneg %p730_p13  ;;  %p737_p1 = por %p736_p9, %p735_p5 }
  0x54   : > { %p738_p4 = pnand %p737_p1, %p731_p0 }
  0x56   : > { %741 = shalt.err (!%p738_p4)
}
  0x57   : > { %612 = dma.hbm_to_vmem [thread:$0]  (!%p938_p11), %s945_s5, 128, %s207_s8, %s196_s14  }
  0x58   : > { %p1068_p6 = scmp.ne.s32.totalorder %s1062_s23, 0 }
  0x59   : > { %s990_s2 = sand.u32 (!%p1068_p6), 1, %s806_s16   ;;  %p1069_p7 = scmp.ne.s32.totalorder (!%p1068_p6), %s1060_s21, 0 }
  0x5a   : > { %215 = sbr.rel (%p1068_p6) target bundleno = 516 (0x204), region = 36  ;;  %s993_s7 = sshll.u32 (!%p1068_p6), %s990_s2, 3 }
  0x5b   : > { %s218_s20 = scalar_lea.sflag (!%p1068_p6), [#allocation3], %s990_s2  ;;  %s221_s25 = scalar_lea.vmem (!%p1068_p6), [#allocation2], %s993_s7 }
  0x5f   : > { %785 = dma.done.wait (%p1069_p7), %s218_s20, 128  }
  0x60   : > { %787 = vsyncadd (%p1069_p7), %s218_s20, 4294967168  ;;  %s226_s23 = sand.u32 1, %s870_s19   ;;  %s230_s5 = scalar_lea.vmem [#allocation5], %s993_s7 }
  0x61   : > { %s227_s28 = scalar_lea.sflag [#allocation6], %s226_s23 }
  0x62   : > { %789 = dma.done.wait (%p1069_p7), %s227_s28, 128  }
  0x63   : > { %791 = vsyncadd (%p1069_p7), %s227_s28, 4294967168  ;;  %p1070_p11 = scmp.eq.s32.totalorder %s870_s19, 0 }
  0x65   : > { %793 = dma.done.wait (%p1070_p11), [#allocation6], 512   ;;  %p1071_p8 = pmov %p1070_p11 }
  0x66   : > { %v821_v0 = vmov 0.0   ;;  %vm822_vm0 = vmmov 0   ;;  %v268_v1 = vld [vmem:[#allocation7 + $0x18] sm:$0xff]  ;;  %v267_v2 = vld [vmem:[#allocation7 + $0x10] sm:$0xff]  ;;  %v266_v3 = vld [vmem:[#allocation7 + $0x8] sm:$0xff]  ;;  %vm269_vm1 = vcmask 261120  }
  0x67   : > { %795 = vsyncadd (%p1071_p8), [#allocation6], 4294966784  ;;  %576 = vmatprep.subr.mxu0 %v821_v0  ;;  %584 = vmatprep.mubr.msk.f32.mxu0 %vm822_vm0, %v821_v0  ;;  %v265_v4 = vld [vmem:[#allocation7] sm:$0xff]  ;;  %v343_v6 = vld [vmem:[%s230_s5] sm:$0xff]  ;;  %vm344_vm2 = vcmask 64512   ;;  %s566_s14 = sshll.u32 %s870_s19, 7 }
  0x68   : > { %587 = vmatprep.subr.mxu1 %v821_v0  ;;  %589 = vmatprep.mubr.msk.f32.mxu1 %vm822_vm0, %v821_v0  ;;  %v264_v5 = vld [vmem:[%s221_s25] sm:$0xff]  ;;  %v345_v7 = vsel %vm344_vm2, %v343_v6, 0.0  ;;  %s263_s11 = scalar_lea.vmem [#allocation8], %s993_s7  ;;  %s445_s13 = scalar_lea.hbm %s1054_s4, %s566_s14 }
  0x69   : > { %577 = vmatpush3.msra.mxu0 %v268_v1  ;;  %346 = vadd.xlane.f32.xlu0 %v345_v7  ;;  %v564_v14 = vld [vmem:[%s1053_s3] ss:$0 sm:$0xff]  ;;  %s447_s12 = sshll.u32 %s263_s11, 4  ;;  %s434_s24 = scalar_lea.sflag [#allocation4], %s990_s2  ;;  %s448_s12 = int_to_ptr.vmem [resolvable:$true] %s447_s12 }
  0x6a   : > { %578 = vmatprep.subr.mxu0 %v821_v0  ;;  %s742_s26 = scalar_lea.vmem %s448_s12, 128  ;;  %p1072_p12 = scmp.ne.s32.totalorder %s1066_s10, 0 }
  0x6b   : > { %579 = vmatpush3.msra.mxu0 %v267_v2  ;;  %p743_p3 = scmp.ne.s32.totalorder %s448_s12, %s742_s26  ;;  %s823_s6 = smov [#allocation8]  }
  0x6c   : > { %580 = vmatprep.subr.mxu0 %v821_v0  ;;  %s746_s20 = sshll.u32 %s823_s6, 4  ;;  %s747_s20 = int_to_ptr.vmem [resolvable:$false] %s746_s20 }
  0x6d   : > { %581 = vmatpush3.msra.mxu0 %v266_v3  ;;  %p744_p10 = pnand %p743_p3, %p1072_p12  ;;  %s748_s19 = scalar_lea.vmem %s747_s20, 256 }
  0x6e   : > { %582 = vmatprep.subr.mxu0 %v821_v0  ;;  %p749_p13 = scmp.lt.s32.totalorder %s448_s12, %s747_s20  ;;  %p750_p0 = scmp.lt.s32.totalorder %s748_s19, %s742_s26 }
  0x6f   : > { %583 = vmatpush3.msra.mxu0 %v265_v4  ;;  %p745_p2 = pneg %p744_p10 }
  0x70   : > { %585 = vmatmul.mubr.msk.f32.vlgmr.msra.gmra.mxu0 %vm269_vm1, %v264_v5  ;;  %p751_p5 = por %p750_p0, %p749_p13 }
  0x72   : > { %p752_p9 = pnand %p751_p5, %p745_p2 }
  0xf2   : > { %v347_v10 = vpop.xlane.xlu0 %346 }
  0xf3   : > { %v348_v11 = vadd.f32 1.0, %v347_v10 }
  0xf5   : > { %658 = vrcp.f32 %v348_v11 }
 0x102   : > { %v659_v12 = vpop.eup %658 }
 0x130   : > { %v339_v8 = vpop.f32.mrf.mxu0 }
 0x131   : > { %588 = vmatpush3.msra.mxu1 %v339_v8 }
 0x132   : > { %v586_v9 = vpop.f32.mrf.mxu0  ;;  %590 = vmatmul.mubr.msk.f32.vlgmr.msra.gmra.mxu1 %vm344_vm2, %v343_v6 }
 0x1f2   : > { %v418_v13 = vpop.f32.mrf.mxu1 }
 0x1f3   : > { %v423_v15 = vmul.f32 %v659_v12, %v418_v13 }
 0x1f4   : > { %v591_v16 = vpop.f32.mrf.mxu1 }
 0x1f5   : > { %v431_v17 = vadd.f32 %v564_v14, %v423_v15 }
 0x1f7   : > { %432 = vst [vmem:[%s263_s11] sm:$0xff] %v431_v17 }
 0x1f8   : > { %755 = shalt.err (!%p752_p9)
}
 0x1f9   : > { %s756_s7 = scalar_lea.hbm %s445_s13, 128  ;;  %s760_s23 = scalar_lea.hbm %s1054_s4, 256 }
 0x1fa   : > { %p757_p1 = scmp.ne.s32.totalorder %s445_s13, %s756_s7  ;;  %p761_p7 = scmp.lt.s32.totalorder %s445_s13, %s1054_s4 }
 0x1fb   : > { %p762_p11 = scmp.lt.s32.totalorder %s760_s23, %s756_s7 }
 0x1fc   : > { %p758_p4 = pnand %p757_p1, %p1072_p12 }
 0x1fd   : > { %p763_p8 = por %p762_p11, %p761_p7 }
 0x1fe   : > { %p759_p6 = pneg %p758_p4 }
 0x200   : > { %p764_p3 = pnand %p763_p8, %p759_p6 }
 0x202   : > { %767 = shalt.err (!%p764_p3)
}
 0x203   : > { %600 = dma.vmem_to_hbm [thread:$0]  (%p1072_p12), %s448_s12, 128, %s445_s13, %s434_s24  }
 0x204 PF: > { %s459_s21 = sand.u32 1, %s802_s15   ;;  %p1073_p10 = scmp.ne.s32.totalorder %s1061_s22, 0 }
 0x205   : > { %p1074_p2 = scmp.ge.s32.totalorder %s814_s18, 2  ;;  %s460_s8 = scalar_lea.sflag [#allocation4], %s459_s21 }
 0x207   : > { %p614_p13 = pnand %p1074_p2, %p1073_p10 }
 0x209   : > { %p615_p0 = pneg %p614_p13 }
 0x20b   : > { %797 = dma.done.wait (%p615_p0), %s460_s8, 128  }
 0x20c   : > { %799 = vsyncadd (%p615_p0), %s460_s8, 4294967168  ;;  %p20_p5 = scmp.ge.s32.totalorder %s903_s27, 4   ;;  %s1075_s15 = smov %s806_s16 }
 0x20d   : > { %s1076_s16 = smov %s810_s17  ;;  %s1077_s17 = smov %s920_s9 }
 0x20e   : > { %s1078_s18 = smov %s903_s27  ;;  %22 = sbr.rel (!%p20_p5) target bundleno = 9 (0x9), region = 98 }
 0x213   :  { %465 = vsyncpa [#allocation3], 1 }
 0x214   :  { %467 = vsyncpa [#allocation3 + $0x1], 1 }
 0x215   :  { %468 = vsyncpa [#allocation6], 1 }
 0x216   :  { %470 = vsyncpa [#allocation6 + $0x1], 1 }
 0x217   :  { %471 = vsyncpa [#allocation4], 1 }
 0x218   :  { %473 = vsyncpa [#allocation4 + $0x1], 1 }

</bundles_post_ra>
